<compile_context>
chip_gen: v7x
topology: tpu7x:2x2x1
jax: 0.10.0
libtpu: 0.0.40
codegen_flags: <defaults>
</compile_context>

<pallas_src>
import functools
import math

import jax
import jax.numpy as jnp
from jax import lax
from jax.scipy.special import logsumexp
from jax.experimental import pallas as pl
from jax.experimental.pallas import tpu as pltpu


# ----------------------------------------------------------------------------
# Kernel: full Sinkhorn forward for one (batched) pair of point clouds.
# ----------------------------------------------------------------------------
def _sinkhorn_kernel(x_ref, y_ref, cost_ref, pi_ref, c_ref, nits_ref, *,
                     eps, max_iter, thresh):
    x = x_ref[...].astype(jnp.float32)                         # (N, P1, D)
    y = y_ref[...].astype(jnp.float32)                         # (N, P2, D)
    n, p1, _ = x.shape
    p2 = y.shape[1]

    # ---- cost matrix via the Gram identity (single batched MXU matmul) ----
    x_sq = jnp.sum(x * x, axis=-1, keepdims=True)              # (N, P1, 1)
    y_sq = jnp.sum(y * y, axis=-1)[:, None, :]                 # (N, 1, P2)
    xy = jnp.einsum("bid,bjd->bij", x, y,
                    preferred_element_type=jnp.float32)        # (N, P1, P2)
    C = jnp.maximum(x_sq + y_sq - 2.0 * xy, 0.0)

    inv_eps = 1.0 / eps
    neg_c_over_eps = C * (-inv_eps)                            # hoisted out of the loop
    log_mu = math.log(1.0 / p1 + 1e-8)                         # uniform weights (scalars)
    log_nu = math.log(1.0 / p2 + 1e-8)

    def modified_cost(u, v):                                   # M = (-C + u + v) / eps
        return neg_c_over_eps + (u + v) * inv_eps

    def lse_lanes(m):                                          # logsumexp over j -> (N, P1, 1)
        mx = jnp.max(m, axis=-1, keepdims=True)
        return jnp.log(jnp.sum(jnp.exp(m - mx), axis=-1, keepdims=True)) + mx

    def lse_sublanes(m):                                       # logsumexp over i -> (N, 1, P2)
        mx = jnp.max(m, axis=-2, keepdims=True)
        return jnp.log(jnp.sum(jnp.exp(m - mx), axis=-2, keepdims=True)) + mx

    def cond_fn(carry):
        it, _, _, err = carry
        return jnp.logical_and(it < max_iter, err >= thresh)

    def body_fn(carry):
        it, u, v, _ = carry
        u_new = eps * (log_mu - lse_lanes(modified_cost(u, v))) + u
        v_new = eps * (log_nu - lse_sublanes(modified_cost(u_new, v))) + v
        err = jnp.sum(jnp.abs(u_new - u)) * (1.0 / n)          # mean_b sum_i |du|
        return (it + 1, u_new, v_new, err)

    carry0 = (jnp.asarray(0, jnp.int32),
              jnp.zeros((n, p1, 1), jnp.float32),
              jnp.zeros((n, 1, p2), jnp.float32),
              jnp.asarray(1e30, jnp.float32))                  # always >= thresh -> >=1 iter
    nits, u, v, _ = lax.while_loop(cond_fn, body_fn, carry0)

    pi = jnp.exp(modified_cost(u, v))                          # transport plan
    c_ref[...] = C
    pi_ref[...] = pi
    cost_ref[...] = jnp.sum(jnp.sum(pi * C, axis=-1, keepdims=True),
                            axis=-2, keepdims=True)            # (N, 1, 1)
    nits_ref[0] = nits                                         # executed iterations


# ----------------------------------------------------------------------------
# Wrapper
# ----------------------------------------------------------------------------
def sinkhorn_distance(x, y, *, eps, max_iter, reduction="none",
                      return_num_iters=False):
    """Pallas implementation of SinkhornDistance.forward -> (cost, pi, C)."""
    squeeze = (x.ndim == 2)
    if squeeze:
        x, y = x[None], y[None]
    assert x.ndim == 3 and y.ndim == 3
    n, p1, d = x.shape
    n2, p2, d2 = y.shape
    assert n == n2 and d == d2

    kernel = functools.partial(_sinkhorn_kernel, eps=float(eps),
                               max_iter=int(max_iter), thresh=0.1)

    flops = (2 * n * p1 * p2 * d + 4 * n * (p1 + p2) * d
             + int(max_iter) * 12 * n * p1 * p2)
    transcendentals = (2 * int(max_iter) + 1) * n * p1 * p2
    bytes_accessed = 4 * (n * p1 * d + n * p2 * d + 2 * n * p1 * p2 + n) + 4

    cost3d, pi, c, nits = pl.pallas_call(
        kernel,
        out_shape=(
            jax.ShapeDtypeStruct((n, 1, 1), jnp.float32),       # per-batch cost
            jax.ShapeDtypeStruct((n, p1, p2), jnp.float32),     # pi
            jax.ShapeDtypeStruct((n, p1, p2), jnp.float32),     # C
            jax.ShapeDtypeStruct((1,), jnp.int32),              # executed iterations
        ),
        grid=(1,),
        in_specs=[
            pl.BlockSpec((n, p1, d), lambda i: (0, 0, 0)),
            pl.BlockSpec((n, p2, d), lambda i: (0, 0, 0)),
        ],
        out_specs=(
            pl.BlockSpec((n, 1, 1), lambda i: (0, 0, 0)),
            pl.BlockSpec((n, p1, p2), lambda i: (0, 0, 0)),
            pl.BlockSpec((n, p1, p2), lambda i: (0, 0, 0)),
            pl.BlockSpec(memory_space=pltpu.MemorySpace.SMEM),
        ),
        compiler_params=pltpu.CompilerParams(
            dimension_semantics=("arbitrary",)),
        cost_estimate=pl.CostEstimate(flops=flops,
                                      transcendentals=transcendentals,
                                      bytes_accessed=bytes_accessed),
    )(x, y)

    cost = cost3d.reshape(n)
    if squeeze:
        cost, pi, c = cost[0], pi[0], c[0]
    if reduction == "mean":
        cost = jnp.mean(cost)
    elif reduction == "sum":
        cost = jnp.sum(cost)
    if return_num_iters:
        return cost, pi, c, nits[0]
    return cost, pi, c


# ----------------------------------------------------------------------------
# Pure-JAX reference mirroring the PyTorch forward.  The cost matrix uses the
# exact broadcasted |x - y|^2 formula of `_cost_matrix`.  It runs exactly
# `num_iters` Sinkhorn sweeps; the kernel reports how many sweeps its
# data-dependent early exit executed (== the module's `self.count`), so the
# comparison is independent of sub-ulp differences right at the 0.1 threshold.
# ----------------------------------------------------------------------------
def _sinkhorn_ref(x, y, eps, num_iters):
    x = x.astype(jnp.float32)
    y = y.astype(jnp.float32)
    n, p1, _ = x.shape
    p2 = y.shape[1]
    C = jnp.sum(jnp.abs(x[:, :, None, :] - y[:, None, :, :]) ** 2, axis=-1)
    mu = jnp.full((n, p1), 1.0 / p1, jnp.float32)
    nu = jnp.full((n, p2), 1.0 / p2, jnp.float32)
    u = jnp.zeros_like(mu)
    v = jnp.zeros_like(nu)

    def M(u, v):
        return (-C + u[:, :, None] + v[:, None, :]) / eps

    for _ in range(num_iters):
        u = eps * (jnp.log(mu + 1e-8) - logsumexp(M(u, v), axis=-1)) + u
        v = eps * (jnp.log(nu + 1e-8)
                   - logsumexp(jnp.swapaxes(M(u, v), -2, -1), axis=-1)) + v
    pi = jnp.exp(M(u, v))
    cost = jnp.sum(pi * C, axis=(-2, -1))
    return cost, pi, C


if __name__ == "__main__":
    # Small 3-D point clouds (typical use of this loss): batch=2, 16 vs 8 pts.
    N, P1, P2, D = 2, 16, 8, 3
    EPS, MAX_ITER = 1.0, 100

    key = jax.random.PRNGKey(0)
    kx, ky = jax.random.split(key)
    x = jax.random.normal(kx, (N, P1, D), dtype=jnp.float32)
    y = jax.random.normal(ky, (N, P2, D), dtype=jnp.float32) + 0.5

    cost, pi, C, nits = sinkhorn_distance(x, y, eps=EPS, max_iter=MAX_ITER,
                                          return_num_iters=True)
    cost, pi, C, nits = jax.block_until_ready((cost, pi, C, nits))
    nits = int(nits)
    assert 1 <= nits <= MAX_ITER, f"bad iteration count {nits}"

    cost_r, pi_r, C_r = _sinkhorn_ref(x, y, EPS, nits)

    # Tolerances leave headroom for MXU matmul precision in the C build.
    assert jnp.allclose(C, C_r, rtol=1e-2, atol=5e-2), "C mismatch"
    assert jnp.allclose(pi, pi_r, rtol=5e-2, atol=1e-5), "pi mismatch"
    assert jnp.allclose(cost, cost_r, rtol=5e-2, atol=1e-2), "cost mismatch"

    # Exercise the reduction paths once.
    cost_mean, _, _ = sinkhorn_distance(x, y, eps=EPS, max_iter=MAX_ITER,
                                        reduction="mean")
    cost_sum, _, _ = sinkhorn_distance(x, y, eps=EPS, max_iter=MAX_ITER,
                                       reduction="sum")
    cost_mean, cost_sum = jax.block_until_ready((cost_mean, cost_sum))
    assert jnp.allclose(cost_mean, jnp.mean(cost_r), rtol=5e-2, atol=1e-2)
    assert jnp.allclose(cost_sum, jnp.sum(cost_r), rtol=5e-2, atol=1e-2)

    print("KERNEL_OK")
</pallas_src>

<mosaic_0001>
module attributes {stable_mosaic.version = 11 : i64} {
  func.func @_sinkhorn_kernel(%arg0: i32, %arg1: memref<2x16x3xf32, #tpu.memory_space<vmem>>, %arg2: memref<2x8x3xf32, #tpu.memory_space<vmem>>, %arg3: memref<2x1x1xf32, #tpu.memory_space<vmem>>, %arg4: memref<2x16x8xf32, #tpu.memory_space<vmem>>, %arg5: memref<2x16x8xf32, #tpu.memory_space<vmem>>, %arg6: memref<1xi32, #tpu.memory_space<smem>>) attributes {dimension_semantics = [#tpu.dimension_semantics<arbitrary>], iteration_bounds = array<i64: 1>, scalar_prefetch = 0 : i64, scratch_operands = 0 : i64, tpu.core_type = #tpu.core_type<tc>, window_params = [{pipeline_mode = #tpu.pipeline_mode<synchronous>, transform_indices = @transform_0, window_bounds = array<i64: 2, 16, 3>}, {pipeline_mode = #tpu.pipeline_mode<synchronous>, transform_indices = @transform_1, window_bounds = array<i64: 2, 8, 3>}, {pipeline_mode = #tpu.pipeline_mode<synchronous>, transform_indices = @transform_2, window_bounds = array<i64: 2, 1, 1>}, {pipeline_mode = #tpu.pipeline_mode<synchronous>, transform_indices = @transform_3, window_bounds = array<i64: 2, 16, 8>}, {pipeline_mode = #tpu.pipeline_mode<synchronous>, transform_indices = @transform_4, window_bounds = array<i64: 2, 16, 8>}, {transform_indices = @transform_5, window_bounds = array<i64: 1>}]} {
    %c0 = arith.constant 0 : index
    %c0_0 = arith.constant 0 : index
    %c0_1 = arith.constant 0 : index
    %0 = vector.load %arg1[%c0, %c0_0, %c0_1] : memref<2x16x3xf32, #tpu.memory_space<vmem>>, vector<2x16x3xf32>
    %c0_2 = arith.constant 0 : index
    %c0_3 = arith.constant 0 : index
    %c0_4 = arith.constant 0 : index
    %1 = vector.load %arg2[%c0_2, %c0_3, %c0_4] : memref<2x8x3xf32, #tpu.memory_space<vmem>>, vector<2x8x3xf32>
    %2 = arith.mulf %0, %0 : vector<2x16x3xf32>
    %cst = arith.constant dense<0.000000e+00> : vector<2x16xf32>
    %3 = vector.multi_reduction <add>, %2, %cst [2] : vector<2x16x3xf32> to vector<2x16xf32>
    %4 = vector.shape_cast %3 : vector<2x16xf32> to vector<2x16x1xf32>
    %5 = arith.mulf %1, %1 : vector<2x8x3xf32>
    %cst_5 = arith.constant dense<0.000000e+00> : vector<2x8xf32>
    %6 = vector.multi_reduction <add>, %5, %cst_5 [2] : vector<2x8x3xf32> to vector<2x8xf32>
    %7 = vector.shape_cast %6 : vector<2x8xf32> to vector<2x1x8xf32>
    "tpu.trace_start"() <{level = 10 : i32, message = "bid,bjd->bij"}> : () -> ()
    %cst_6 = arith.constant dense<0.000000e+00> : vector<2x16x8xf32>
    %8 = tpu.matmul %0, %1, %cst_6 {dimension_numbers = #tpu.dot_dimension_numbers<[2], [2], [1], [1], [0, 0, 0, 1, 1, 1], [0], [0]>} : vector<2x16x3xf32>, vector<2x8x3xf32>, vector<2x16x8xf32> -> vector<2x16x8xf32>
    "tpu.trace_stop"() : () -> ()
    %9 = vector.broadcast %4 : vector<2x16x1xf32> to vector<2x16x8xf32>
    %10 = vector.broadcast %7 : vector<2x1x8xf32> to vector<2x16x8xf32>
    %11 = arith.addf %9, %10 : vector<2x16x8xf32>
    %cst_7 = arith.constant 2.000000e+00 : f32
    %12 = vector.broadcast %cst_7 : f32 to vector<2x16x8xf32>
    %13 = arith.mulf %12, %8 : vector<2x16x8xf32>
    %14 = arith.subf %11, %13 : vector<2x16x8xf32>
    %cst_8 = arith.constant 0.000000e+00 : f32
    %15 = vector.broadcast %cst_8 : f32 to vector<2x16x8xf32>
    %16 = arith.maximumf %14, %15 : vector<2x16x8xf32>
    %cst_9 = arith.constant -1.000000e+00 : f32
    %17 = vector.broadcast %cst_9 : f32 to vector<2x16x8xf32>
    %18 = arith.mulf %16, %17 : vector<2x16x8xf32>
    %cst_10 = arith.constant 0.000000e+00 : f32
    %19 = vector.broadcast %cst_10 : f32 to vector<2x16x1xf32>
    %cst_11 = arith.constant 0.000000e+00 : f32
    %20 = vector.broadcast %cst_11 : f32 to vector<2x1x8xf32>
    %c0_i32 = arith.constant 0 : i32
    %cst_12 = arith.constant 1.000000e+30 : f32
    %21:4 = scf.while (%arg7 = %c0_i32, %arg8 = %19, %arg9 = %20, %arg10 = %cst_12) : (i32, vector<2x16x1xf32>, vector<2x1x8xf32>, f32) -> (i32, vector<2x16x1xf32>, vector<2x1x8xf32>, f32) {
      %c100_i32 = arith.constant 100 : i32
      %38 = arith.cmpi slt, %arg7, %c100_i32 : i32
      %cst_26 = arith.constant 1.000000e-01 : f32
      %39 = arith.cmpf oge, %arg10, %cst_26 : f32
      %40 = arith.andi %38, %39 : i1
      scf.condition(%40) %arg7, %arg8, %arg9, %arg10 : i32, vector<2x16x1xf32>, vector<2x1x8xf32>, f32
    } do {
    ^bb0(%arg7: i32, %arg8: vector<2x16x1xf32>, %arg9: vector<2x1x8xf32>, %arg10: f32):
      %38 = vector.broadcast %arg8 : vector<2x16x1xf32> to vector<2x16x8xf32>
      %39 = vector.broadcast %arg9 : vector<2x1x8xf32> to vector<2x16x8xf32>
      %40 = arith.addf %38, %39 : vector<2x16x8xf32>
      %cst_26 = arith.constant 1.000000e+00 : f32
      %41 = vector.broadcast %cst_26 : f32 to vector<2x16x8xf32>
      %42 = arith.mulf %40, %41 : vector<2x16x8xf32>
      %43 = arith.addf %18, %42 : vector<2x16x8xf32>
      %cst_27 = arith.constant dense<0xFF800000> : vector<2x16xf32>
      %44 = vector.multi_reduction <maximumf>, %43, %cst_27 [2] : vector<2x16x8xf32> to vector<2x16xf32>
      %45 = vector.shape_cast %44 : vector<2x16xf32> to vector<2x16x1xf32>
      %46 = vector.broadcast %45 : vector<2x16x1xf32> to vector<2x16x8xf32>
      %47 = arith.subf %43, %46 : vector<2x16x8xf32>
      %48 = math.exp %47 : vector<2x16x8xf32>
      %cst_28 = arith.constant dense<0.000000e+00> : vector<2x16xf32>
      %49 = vector.multi_reduction <add>, %48, %cst_28 [2] : vector<2x16x8xf32> to vector<2x16xf32>
      %50 = vector.shape_cast %49 : vector<2x16xf32> to vector<2x16x1xf32>
      %51 = math.log %50 : vector<2x16x1xf32>
      %52 = arith.addf %51, %45 : vector<2x16x1xf32>
      %cst_29 = arith.constant -2.77258849 : f32
      %53 = vector.broadcast %cst_29 : f32 to vector<2x16x1xf32>
      %54 = arith.subf %53, %52 : vector<2x16x1xf32>
      %cst_30 = arith.constant 1.000000e+00 : f32
      %55 = vector.broadcast %cst_30 : f32 to vector<2x16x1xf32>
      %56 = arith.mulf %55, %54 : vector<2x16x1xf32>
      %57 = arith.addf %56, %arg8 : vector<2x16x1xf32>
      %58 = vector.broadcast %57 : vector<2x16x1xf32> to vector<2x16x8xf32>
      %59 = vector.broadcast %arg9 : vector<2x1x8xf32> to vector<2x16x8xf32>
      %60 = arith.addf %58, %59 : vector<2x16x8xf32>
      %cst_31 = arith.constant 1.000000e+00 : f32
      %61 = vector.broadcast %cst_31 : f32 to vector<2x16x8xf32>
      %62 = arith.mulf %60, %61 : vector<2x16x8xf32>
      %63 = arith.addf %18, %62 : vector<2x16x8xf32>
      %cst_32 = arith.constant dense<0xFF800000> : vector<2x8xf32>
      %64 = vector.multi_reduction <maximumf>, %63, %cst_32 [1] : vector<2x16x8xf32> to vector<2x8xf32>
      %65 = vector.shape_cast %64 : vector<2x8xf32> to vector<2x1x8xf32>
      %66 = vector.broadcast %65 : vector<2x1x8xf32> to vector<2x16x8xf32>
      %67 = arith.subf %63, %66 : vector<2x16x8xf32>
      %68 = math.exp %67 : vector<2x16x8xf32>
      %cst_33 = arith.constant dense<0.000000e+00> : vector<2x8xf32>
      %69 = vector.multi_reduction <add>, %68, %cst_33 [1] : vector<2x16x8xf32> to vector<2x8xf32>
      %70 = vector.shape_cast %69 : vector<2x8xf32> to vector<2x1x8xf32>
      %71 = math.log %70 : vector<2x1x8xf32>
      %72 = arith.addf %71, %65 : vector<2x1x8xf32>
      %cst_34 = arith.constant -2.07944155 : f32
      %73 = vector.broadcast %cst_34 : f32 to vector<2x1x8xf32>
      %74 = arith.subf %73, %72 : vector<2x1x8xf32>
      %cst_35 = arith.constant 1.000000e+00 : f32
      %75 = vector.broadcast %cst_35 : f32 to vector<2x1x8xf32>
      %76 = arith.mulf %75, %74 : vector<2x1x8xf32>
      %77 = arith.addf %76, %arg9 : vector<2x1x8xf32>
      %78 = arith.subf %57, %arg8 : vector<2x16x1xf32>
      %79 = math.absf %78 : vector<2x16x1xf32>
      %80 = vector.shape_cast %79 : vector<2x16x1xf32> to vector<1x2x16x1xf32>
      %cst_36 = arith.constant dense<0.000000e+00> : vector<1xf32>
      %81 = vector.multi_reduction <add>, %80, %cst_36 [1, 2, 3] : vector<1x2x16x1xf32> to vector<1xf32>
      %82 = vector.shape_cast %81 : vector<1xf32> to vector<1x1x1x1xf32>
      %83 = vector.extract %82[0, 0, 0, 0] : f32 from vector<1x1x1x1xf32>
      %cst_37 = arith.constant 5.000000e-01 : f32
      %84 = arith.mulf %83, %cst_37 : f32
      %c1_i32 = arith.constant 1 : i32
      %85 = arith.addi %arg7, %c1_i32 : i32
      scf.yield %85, %57, %77, %84 : i32, vector<2x16x1xf32>, vector<2x1x8xf32>, f32
    }
    %22 = vector.broadcast %21#1 : vector<2x16x1xf32> to vector<2x16x8xf32>
    %23 = vector.broadcast %21#2 : vector<2x1x8xf32> to vector<2x16x8xf32>
    %24 = arith.addf %22, %23 : vector<2x16x8xf32>
    %cst_13 = arith.constant 1.000000e+00 : f32
    %25 = vector.broadcast %cst_13 : f32 to vector<2x16x8xf32>
    %26 = arith.mulf %24, %25 : vector<2x16x8xf32>
    %27 = arith.addf %18, %26 : vector<2x16x8xf32>
    %28 = math.exp %27 : vector<2x16x8xf32>
    %c0_14 = arith.constant 0 : index
    %c0_15 = arith.constant 0 : index
    %c0_16 = arith.constant 0 : index
    %29 = vector.load %arg5[%c0_14, %c0_15, %c0_16] : memref<2x16x8xf32, #tpu.memory_space<vmem>>, vector<2x16x8xf32>
    tpu.vector_store %arg5[%c0_14, %c0_15, %c0_16], %16 {strides = array<i32>} : memref<2x16x8xf32, #tpu.memory_space<vmem>>, vector<2x16x8xf32>,
    %c0_17 = arith.constant 0 : index
    %c0_18 = arith.constant 0 : index
    %c0_19 = arith.constant 0 : index
    %30 = vector.load %arg4[%c0_17, %c0_18, %c0_19] : memref<2x16x8xf32, #tpu.memory_space<vmem>>, vector<2x16x8xf32>
    tpu.vector_store %arg4[%c0_17, %c0_18, %c0_19], %28 {strides = array<i32>} : memref<2x16x8xf32, #tpu.memory_space<vmem>>, vector<2x16x8xf32>,
    %31 = arith.mulf %28, %16 : vector<2x16x8xf32>
    %cst_20 = arith.constant dense<0.000000e+00> : vector<2x16xf32>
    %32 = vector.multi_reduction <add>, %31, %cst_20 [2] : vector<2x16x8xf32> to vector<2x16xf32>
    %33 = vector.shape_cast %32 : vector<2x16xf32> to vector<2x16x1xf32>
    %cst_21 = arith.constant dense<0.000000e+00> : vector<2x1xf32>
    %34 = vector.multi_reduction <add>, %33, %cst_21 [1] : vector<2x16x1xf32> to vector<2x1xf32>
    %35 = vector.shape_cast %34 : vector<2x1xf32> to vector<2x1x1xf32>
    %c0_22 = arith.constant 0 : index
    %c0_23 = arith.constant 0 : index
    %c0_24 = arith.constant 0 : index
    %36 = vector.load %arg3[%c0_22, %c0_23, %c0_24] : memref<2x1x1xf32, #tpu.memory_space<vmem>>, vector<2x1x1xf32>
    tpu.vector_store %arg3[%c0_22, %c0_23, %c0_24], %35 {strides = array<i32>} : memref<2x1x1xf32, #tpu.memory_space<vmem>>, vector<2x1x1xf32>,
    %c0_25 = arith.constant 0 : index
    %37 = memref.load %arg6[%c0_25] : memref<1xi32, #tpu.memory_space<smem>>
    memref.store %21#0, %arg6[%c0_25] : memref<1xi32, #tpu.memory_space<smem>>
    return
  }
  func.func @transform_0(%arg0: i32) -> (i32, i32, i32) {
    %c0_i32 = arith.constant 0 : i32
    %c0_i32_0 = arith.constant 0 : i32
    %c0_i32_1 = arith.constant 0 : i32
    %c0_i32_2 = arith.constant 0 : i32
    return %c0_i32, %c0_i32_0, %c0_i32_1 : i32, i32, i32
  }
  func.func @transform_1(%arg0: i32) -> (i32, i32, i32) {
    %c0_i32 = arith.constant 0 : i32
    %c0_i32_0 = arith.constant 0 : i32
    %c0_i32_1 = arith.constant 0 : i32
    %c0_i32_2 = arith.constant 0 : i32
    return %c0_i32, %c0_i32_0, %c0_i32_1 : i32, i32, i32
  }
  func.func @transform_2(%arg0: i32) -> (i32, i32, i32) {
    %c0_i32 = arith.constant 0 : i32
    %c0_i32_0 = arith.constant 0 : i32
    %c0_i32_1 = arith.constant 0 : i32
    %c0_i32_2 = arith.constant 0 : i32
    return %c0_i32, %c0_i32_0, %c0_i32_1 : i32, i32, i32
  }
  func.func @transform_3(%arg0: i32) -> (i32, i32, i32) {
    %c0_i32 = arith.constant 0 : i32
    %c0_i32_0 = arith.constant 0 : i32
    %c0_i32_1 = arith.constant 0 : i32
    %c0_i32_2 = arith.constant 0 : i32
    return %c0_i32, %c0_i32_0, %c0_i32_1 : i32, i32, i32
  }
  func.func @transform_4(%arg0: i32) -> (i32, i32, i32) {
    %c0_i32 = arith.constant 0 : i32
    %c0_i32_0 = arith.constant 0 : i32
    %c0_i32_1 = arith.constant 0 : i32
    %c0_i32_2 = arith.constant 0 : i32
    return %c0_i32, %c0_i32_0, %c0_i32_1 : i32, i32, i32
  }
  func.func @transform_5(%arg0: i32) -> i32 {
    %c0_i32 = arith.constant 0 : i32
    %c0_i32_0 = arith.constant 0 : i32
    return %c0_i32 : i32
  }
}

</mosaic_0001>

<bundles_post_ra>
// kernel: tpu_custom_call.1
= control target key start
LH: loop header
LB: loop body
LE: loop exit
PB: predicated region body
PF: predicated region fallthrough
CT: control target
= control target key end

     0   :  { %11 = vsyncpa [#allocation3], 0  ;;  %vm26_vm0 = vcmask 23552   ;;  %v217_v19 = vlaneseq  ;;  %v819_v54 = vmov 0.0   ;;  %v821_v55 = vmov 0.0   ;;  %s1014_s0 = inlined_call_operand.vmem [shape: f32[2,16,3], index: 0, kind: input, shape index: {}]   ;;  %s1015_s1 = inlined_call_operand.vmem [shape: f32[2,8,3], index: 1, kind: input, shape index: {}]   ;;  %s1016_s2 = inlined_call_operand.vmem [shape: f32[2,1,1], index: 2, kind: output, shape index: {0}]   ;;  %s1017_s3 = inlined_call_operand.vmem [shape: f32[2,16,8], index: 3, kind: output, shape index: {1}]   ;;  %s1018_s4 = inlined_call_operand.vmem [shape: f32[2,16,8], index: 4, kind: output, shape index: {2}]   ;;  %s1019_s5 = inlined_call_operand.hbm [shape: s32[1], index: 5, kind: output, shape index: {3}]  }
   0x1   :  { %v20_v0 = vld [vmem:[%s1015_s1] sm:$0xff]  ;;  %v21_v1 = vld [vmem:[%s1015_s1 + $0x8] sm:$0xff]  ;;  %v18_v3 = vld [vmem:[%s1014_s0 + $0x10] sm:$0xff]  ;;  %v823_v56 = vmov 0.0   ;;  %v825_v57 = vmov 0.0   ;;  %v827_v58 = vmov 0.0  }
   0x2   :  { %563 = vmatprep.subr.msk.mxu0 %vm26_vm0, %v20_v0  ;;  %568 = vmatprep.subr.msk.mxu1 %vm26_vm0, %v21_v1  ;;  %v16_v2 = vld [vmem:[%s1014_s0] sm:$0xff]  ;;  %v39_v4 = vmul.f32 %v20_v0, %v20_v0  ;;  %v40_v5 = vmul.f32 %v21_v1, %v21_v1  ;;  %v17_v7 = vld [vmem:[%s1014_s0 + $0x8] sm:$0xff]  ;;  %v19_v8 = vld [vmem:[%s1014_s0 + $0x18] sm:$0xff]  ;;  %v24_v12 = vmul.f32 %v18_v3, %v18_v3  ;;  %v218_v21 = vand.u32 127, %v217_v19  ;;  %s831_s0 = smov 0  }
   0x3   :  { %564 = vmatpush3.xpose.msk.msra.mxu0 %vm26_vm0, %v20_v0  ;;  %569 = vmatpush3.xpose.msk.msra.mxu1 %vm26_vm0, %v21_v1  ;;  %v22_v6 = vmul.f32 %v16_v2, %v16_v2  ;;  %v23_v10 = vmul.f32 %v17_v7, %v17_v7  ;;  %v25_v15 = vmul.f32 %v19_v8, %v19_v8  ;;  %v220_v22 = vshrl.u32 %v217_v19, 7 }
   0x4   :  { %565 = vmatprep.mubr.msk.f32.mxu0 %vm26_vm0, %v16_v2  ;;  %570 = vmatprep.mubr.msk.f32.mxu1 %vm26_vm0, %v18_v3  ;;  %v41_v9 = vsel %vm26_vm0, %v39_v4, 0.0  ;;  %v44_v13 = vsel %vm26_vm0, %v40_v5, 0.0  ;;  %v33_v16 = vsel %vm26_vm0, %v24_v12, 0.0  ;;  %v829_v59 = vmov 0.0  }
   0x5   :  { %42 = vadd.xlane.f32.xlu0 %v41_v9  ;;  %v27_v11 = vsel %vm26_vm0, %v22_v6, 0.0  ;;  %v30_v14 = vsel %vm26_vm0, %v23_v10, 0.0  ;;  %v36_v17 = vsel %vm26_vm0, %v25_v15, 0.0  ;;  %v221_v24 = vsub.s32 %v218_v21, %v220_v22 }
   0x6   :  { %566 = vmatmul.mubr.msk.f32.vlgmr.msra.gmra.mrb[0].mxu0 %vm26_vm0, %v17_v7  ;;  %571 = vmatmul.mubr.msk.f32.vlgmr.msra.gmra.mrb[0].mxu1 %vm26_vm0, %v19_v8 }
   0x7   :  { %28 = vadd.xlane.f32.xlu1 %v27_v11 }
   0x9   :  { %45 = vadd.xlane.f32.xlu0 %v44_v13 }
   0xb   :  { %31 = vadd.xlane.f32.xlu1 %v30_v14 }
   0xd   :  { %34 = vadd.xlane.f32.xlu0 %v33_v16 }
   0xf   :  { %37 = vadd.xlane.f32.xlu1 %v36_v17 }
  0x92   :  { %v43_v20 = vpop.xlane.xlu0 %42 }
  0x93   :  { %v222_v28 = vrot.slane %v43_v20, %v221_v24 }
  0x94   :  { %v29_v18 = vpop.xlane.xlu1 %28 }
  0x95   :  { %v247_v38 = vadd.f32 %v222_v28, %v29_v18 }
  0x96   :  { %v46_v25 = vpop.xlane.xlu0 %45 }
  0x97   :  { %v226_v26 = vrot.slane %v46_v25, %v221_v24 }
  0x98   :  { %v32_v23 = vpop.xlane.xlu1 %31 }
  0x99   :  { %v248_v33 = vadd.f32 %v222_v28, %v32_v23 }
  0x9a   :  { %v35_v29 = vpop.xlane.xlu0 %34 }
  0x9b   :  { %v249_v39 = vadd.f32 %v226_v26, %v35_v29 }
  0x9c   :  { %v38_v27 = vpop.xlane.xlu1 %37 }
  0x9d   :  { %v250_v30 = vadd.f32 %v226_v26, %v38_v27 }
  0xd9   :  { %v567_v31 = vpop.f32.mrb[0].mxu0  ;;  %v572_v32 = vpop.f32.mrb[0].mxu1 }
  0xda   :  { %v252_v34 = vmul.f32 2.0, %v567_v31  ;;  %v254_v35 = vmul.f32 2.0, %v572_v32  ;;  %v122_v36 = vpop.f32.mrb[1].mxu0  ;;  %v206_v37 = vpop.f32.mrb[1].mxu1 }
  0xdb   :  { %v251_v40 = vmul.f32 2.0, %v122_v36  ;;  %v253_v41 = vmul.f32 2.0, %v206_v37 }
  0xdc   :  { %v256_v42 = vsub.f32 %v248_v33, %v252_v34  ;;  %v258_v43 = vsub.f32 %v250_v30, %v254_v35 }
  0xdd   :  { %v255_v44 = vsub.f32 %v247_v38, %v251_v40  ;;  %v257_v45 = vsub.f32 %v249_v39, %v253_v41 }
  0xde   :  { %v799_v46 = vmax.f32 %v256_v42, 0.0  ;;  %v801_v47 = vmax.f32 %v258_v43, 0.0 }
  0xdf   :  { %v803_v48 = vmax.f32 %v255_v44, 0.0  ;;  %v805_v49 = vmax.f32 %v257_v45, 0.0 }
  0xe0   :  { %v808_v50 = vmul.f32 -1.0, %v799_v46  ;;  %v811_v51 = vmul.f32 -1.0, %v801_v47 }
  0xe1   :  { %v814_v52 = vmul.f32 -1.0, %v803_v48  ;;  %v817_v53 = vmul.f32 -1.0, %v805_v49 }
  0xe2 LB: > { %v282_v60 = vadd.f32 %v714_v55, %v730_v59  ;;  %v283_v61 = vadd.f32 %v714_v55, %v726_v58  ;;  %vm290_vm1 = vcmask 64512   ;;  %v284_v0 = vadd.f32 %v710_v54, %v722_v57  ;;  %s921_s0 = sadd.s32 1, %s734_s0   ;;  %s734_s0 = sphi %s831_s0, %s1027_s0   ;;  %v730_v59 = vphi %v829_v59, %v1026_v59   ;;  %v726_v58 = vphi %v827_v58, %v1025_v58   ;;  %v722_v57 = vphi %v825_v57, %v1024_v57   ;;  %v718_v56 = vphi %v823_v56, %v1023_v56   ;;  %v714_v55 = vphi %v821_v55, %v1022_v55   ;;  %v710_v54 = vphi %v819_v54, %v1021_v54  }
  0xe3   : > { %v285_v1 = vadd.f32 %v710_v54, %v718_v56  ;;  %vm421_vm2 = vcmask 7168   ;;  %s1020_s29 = smov %s921_s0 }
  0xe4   : > { %v286_v62 = vadd.f32 %v282_v60, %v814_v52  ;;  %v287_v63 = vadd.f32 %v283_v61, %v808_v50  ;;  %v288_v3 = vadd.f32 %v284_v0, %v817_v53  ;;  %p276_p0 = scmp.lt.s32.totalorder %s1020_s29, 100  ;;  %s1027_s0 = smov %s1020_s29 }
  0xe5   : > { %v289_v4 = vadd.f32 %v285_v1, %v811_v51 }
  0xe6   : > { %v291_v2 = vsel %vm290_vm1, %v286_v62, -inf  ;;  %v294_v5 = vsel %vm290_vm1, %v287_v63, -inf  ;;  %v297_v6 = vsel %vm290_vm1, %v288_v3, -inf }
  0xe7   : > { %292 = vmax.xlane.f32.xlu0 %v291_v2  ;;  %298 = vmax.xlane.f32.xlu1 %v297_v6  ;;  %v300_v7 = vsel %vm290_vm1, %v289_v4, -inf }
  0xeb   : > { %295 = vmax.xlane.f32.xlu0 %v294_v5  ;;  %301 = vmax.xlane.f32.xlu1 %v300_v7 }
 0x174   : > { %v293_v8 = vpop.xlane.xlu0 %292  ;;  %v299_v10 = vpop.xlane.xlu1 %298 }
 0x175   : > { %v303_v9 = vsub.f32 %v286_v62, %v293_v8  ;;  %v305_v12 = vsub.f32 %v288_v3, %v299_v10 }
 0x177   : > { %v307_v11 = vmul.f32 1.442695, %v303_v9  ;;  %v311_v15 = vmul.f32 1.442695, %v305_v12 }
 0x178   : > { %v296_v13 = vpop.xlane.xlu0 %295  ;;  %v302_v16 = vpop.xlane.xlu1 %301 }
 0x179   : > { %632 = vpow2.f32 %v307_v11  ;;  %v304_v14 = vsub.f32 %v287_v63, %v296_v13  ;;  %v306_v18 = vsub.f32 %v289_v4, %v302_v16 }
 0x17a   : > { %634 = vpow2.f32 %v311_v15 }
 0x17b   : > { %v309_v17 = vmul.f32 1.442695, %v304_v14  ;;  %v313_v19 = vmul.f32 1.442695, %v306_v18 }
 0x17d   : > { %636 = vpow2.f32 %v309_v17 }
 0x17e   : > { %638 = vpow2.f32 %v313_v19 }
 0x183   : > { %v633_v20 = vpop.eup %632 }
 0x184   : > { %v315_v21 = vsel %vm290_vm1, %v633_v20, 0.0  ;;  %v635_v22 = vpop.eup %634 }
 0x185   : > { %316 = vadd.xlane.f32.xlu0 %v315_v21  ;;  %v321_v23 = vsel %vm290_vm1, %v635_v22, 0.0 }
 0x187   : > { %v637_v24 = vpop.eup %636 }
 0x188   : > { %v318_v25 = vsel %vm290_vm1, %v637_v24, 0.0  ;;  %v639_v26 = vpop.eup %638 }
 0x189   : > { %319 = vadd.xlane.f32.xlu1 %v318_v25  ;;  %322 = vadd.xlane.f32.xlu0 %v321_v23  ;;  %v324_v27 = vsel %vm290_vm1, %v639_v26, 0.0 }
 0x18d   : > { %325 = vadd.xlane.f32.xlu1 %v324_v27 }
 0x212   : > { %v317_v28 = vpop.xlane.xlu0 %316 }
 0x213   : > { %640 = vlog2.f32 %v317_v28 }
 0x216   : > { %v323_v29 = vpop.xlane.xlu0 %322  ;;  %v320_v30 = vpop.xlane.xlu1 %319 }
 0x217   : > { %642 = vlog2.f32 %v323_v29 }
 0x218   : > { %644 = vlog2.f32 %v320_v30 }
 0x21a   : > { %v326_v31 = vpop.xlane.xlu1 %325 }
 0x21b   : > { %646 = vlog2.f32 %v326_v31 }
 0x21d   : > { %v641_v32 = vpop.eup %640 }
 0x21e   : > { %v328_v33 = vmul.f32 0.6931472, %v641_v32 }
 0x220   : > { %v335_v34 = vadd.f32 %v328_v33, %v293_v8 }
 0x221   : > { %v643_v35 = vpop.eup %642 }
 0x222   : > { %v645_v36 = vpop.eup %644  ;;  %v339_v37 = vsub.f32 -2.7725885, %v335_v34  ;;  %v332_v38 = vmul.f32 0.6931472, %v643_v35 }
 0x223   : > { %v330_v39 = vmul.f32 0.6931472, %v645_v36 }
 0x224   : > { %v875_v40 = vadd.f32 %v730_v59, %v339_v37   ;;  %v337_v41 = vadd.f32 %v332_v38, %v299_v10 }
 0x225   : > { %v647_v42 = vpop.eup %646  ;;  %v336_v43 = vadd.f32 %v330_v39, %v296_v13 }
 0x226   : > { %v341_v44 = vsub.f32 -2.7725885, %v337_v41  ;;  %v334_v45 = vmul.f32 0.6931472, %v647_v42  ;;  %v347_v60 = vadd.f32 %v714_v55, %v875_v40  ;;  %v413_v62 = vsub.f32 %v875_v40, %v730_v59 }
 0x227   : > { %v340_v61 = vsub.f32 -2.7725885, %v336_v43 }
 0x228   : > { %v882_v63 = vadd.f32 %v722_v57, %v341_v44   ;;  %v338_v0 = vadd.f32 %v334_v45, %v302_v16  ;;  %v351_v5 = vadd.f32 %v347_v60, %v814_v52  ;;  %v417_v7 = vand.u32 2147483647, %v413_v62 }
 0x229   : > { %v885_v1 = vadd.f32 %v726_v58, %v340_v61  }
 0x22a   : > { %v349_v2 = vadd.f32 %v710_v54, %v882_v63  ;;  %v342_v3 = vsub.f32 -2.7725885, %v338_v0  ;;  %v415_v4 = vsub.f32 %v882_v63, %v722_v57  ;;  %v355_v14 = vsel %vm290_vm1, %v351_v5, -inf }
 0x22b   : > { %v348_v6 = vadd.f32 %v714_v55, %v885_v1  ;;  %v414_v59 = vsub.f32 %v885_v1, %v726_v58  ;;  %v422_v15 = vsel %vm421_vm2, %v417_v7, 0.0 }
 0x22c   : > { %v897_v8 = vadd.f32 %v718_v56, %v342_v3   ;;  %v353_v9 = vadd.f32 %v349_v2, %v817_v53  ;;  %v419_v12 = vand.u32 2147483647, %v415_v4 }
 0x22d   : > { %v352_v10 = vadd.f32 %v348_v6, %v808_v50  ;;  %v418_v11 = vand.u32 2147483647, %v414_v59 }
 0x22e   : > { %v416_v57 = vsub.f32 %v897_v8, %v718_v56  ;;  %v350_v13 = vadd.f32 %v710_v54, %v897_v8  ;;  %v364_v21 = vsel %vm290_vm1, %v353_v9, -inf  ;;  %v425_v56 = vsel %vm421_vm2, %v419_v12, 0.0 }
 0x22f   : > { %v356_v58 = vsel %vm290_vm1, %v352_v10, -inf  ;;  %v423_v16 = vsel %vm421_vm2, %v418_v11, 0.0 }
 0x230   : > { %v357_v17 = vmax.f32 %v355_v14, %v356_v58  ;;  %v420_v18 = vand.u32 2147483647, %v416_v57  ;;  %v424_v19 = vadd.f32 %v423_v16, %v422_v15  ;;  %v354_v20 = vadd.f32 %v350_v13, %v811_v51 }
 0x232   : > { %v358_v22 = vrot.slane %v357_v17, 4  ;;  %v426_v23 = vadd.f32 %v425_v56, %v424_v19  ;;  %v427_v24 = vsel %vm421_vm2, %v420_v18, 0.0  ;;  %v365_v25 = vsel %vm290_vm1, %v354_v20, -inf }
 0x233   : > { %v366_v26 = vmax.f32 %v364_v21, %v365_v25 }
 0x234   : > { %v359_v27 = vmax.f32 %v357_v17, %v358_v22  ;;  %v428_v28 = vadd.f32 %v427_v24, %v426_v23 }
 0x235   : > { %v367_v29 = vrot.slane %v366_v26, 4 }
 0x236   : > { %v360_v30 = vrot.slane %v359_v27, 2  ;;  %429 = vadd.xlane.f32.xlu0 %v428_v28 }
 0x237   : > { %v368_v31 = vmax.f32 %v366_v26, %v367_v29 }
 0x238   : > { %v361_v32 = vmax.f32 %v359_v27, %v360_v30 }
 0x239   : > { %v369_v33 = vrot.slane %v368_v31, 2 }
 0x23a   : > { %v362_v34 = vrot.slane %v361_v32, 1 }
 0x23b   : > { %v370_v35 = vmax.f32 %v368_v31, %v369_v33 }
 0x23c   : > { %v363_v36 = vmax.f32 %v361_v32, %v362_v34 }
 0x23d   : > { %v371_v37 = vrot.slane %v370_v35, 1 }
 0x23e   : > { %v373_v38 = vsub.f32 %v351_v5, %v363_v36  ;;  %v374_v39 = vsub.f32 %v352_v10, %v363_v36 }
 0x23f   : > { %v372_v41 = vmax.f32 %v370_v35, %v371_v37 }
 0x240   : > { %v377_v42 = vmul.f32 1.442695, %v373_v38  ;;  %v379_v43 = vmul.f32 1.442695, %v374_v39 }
 0x241   : > { %v375_v44 = vsub.f32 %v353_v9, %v372_v41  ;;  %v376_v45 = vsub.f32 %v354_v20, %v372_v41 }
 0x242   : > { %648 = vpow2.f32 %v377_v42 }
 0x243   : > { %650 = vpow2.f32 %v379_v43  ;;  %v381_v60 = vmul.f32 1.442695, %v375_v44  ;;  %v383_v61 = vmul.f32 1.442695, %v376_v45 }
 0x245   : > { %652 = vpow2.f32 %v381_v60 }
 0x246   : > { %654 = vpow2.f32 %v383_v61 }
 0x24c   : > { %v649_v62 = vpop.eup %648 }
 0x24d   : > { %v651_v0 = vpop.eup %650  ;;  %v385_v2 = vsel %vm290_vm1, %v649_v62, 0.0 }
 0x24e   : > { %v386_v3 = vsel %vm290_vm1, %v651_v0, 0.0 }
 0x24f   : > { %v653_v4 = vpop.eup %652  ;;  %v387_v5 = vadd.f32 %v386_v3, %v385_v2 }
 0x250   : > { %v655_v6 = vpop.eup %654  ;;  %v394_v59 = vsel %vm290_vm1, %v653_v4, 0.0 }
 0x251   : > { %v388_v7 = vrot.slane %v387_v5, 4  ;;  %v395_v9 = vsel %vm290_vm1, %v655_v6, 0.0 }
 0x252   : > { %v396_v10 = vadd.f32 %v395_v9, %v394_v59  ;;  %v1026_v59 = vmov %v875_v40 }
 0x253   : > { %v389_v11 = vadd.f32 %v388_v7, %v387_v5 }
 0x254   : > { %v397_v12 = vrot.slane %v396_v10, 4 }
 0x255   : > { %v390_v57 = vrot.slane %v389_v11, 2 }
 0x256   : > { %v398_v13 = vadd.f32 %v397_v12, %v396_v10 }
 0x257   : > { %v391_v14 = vadd.f32 %v390_v57, %v389_v11  ;;  %v1024_v57 = vmov %v882_v63 }
 0x258   : > { %v399_v58 = vrot.slane %v398_v13, 2 }
 0x259   : > { %v392_v15 = vrot.slane %v391_v14, 1 }
 0x25a   : > { %v400_v16 = vadd.f32 %v399_v58, %v398_v13  ;;  %v1025_v58 = vmov %v885_v1 }
 0x25b   : > { %v393_v17 = vadd.f32 %v392_v15, %v391_v14 }
 0x25c   : > { %v401_v18 = vrot.slane %v400_v16, 1 }
 0x25d   : > { %656 = vlog2.f32 %v393_v17 }
 0x25e   : > { %v402_v19 = vadd.f32 %v401_v18, %v400_v16 }
 0x260   : > { %658 = vlog2.f32 %v402_v19 }
 0x267   : > { %v657_v20 = vpop.eup %656 }
 0x268   : > { %v404_v21 = vmul.f32 0.6931472, %v657_v20 }
 0x26a   : > { %v659_v56 = vpop.eup %658  ;;  %v407_v22 = vadd.f32 %v404_v21, %v363_v36 }
 0x26b   : > { %v406_v23 = vmul.f32 0.6931472, %v659_v56  ;;  %v1023_v56 = vmov %v897_v8 }
 0x26c   : > { %v409_v24 = vsub.f32 -2.0794415, %v407_v22 }
 0x26d   : > { %v408_v25 = vadd.f32 %v406_v23, %v372_v41 }
 0x26e   : > { %v411_v26 = vadd.f32 %v714_v55, %v409_v24  }
 0x26f   : > { %v410_v27 = vsub.f32 -2.0794415, %v408_v25 }
 0x270   : > { %v1022_v55 = vmov %v411_v26 }
 0x271   : > { %v412_v28 = vadd.f32 %v710_v54, %v410_v27  }
 0x273   : > { %v1021_v54 = vmov %v412_v28 }
 0x2c3   : > { %v430_v29 = vpop.xlane.xlu0 %429 }
 0x2c4   : > { %v431_v30 = vrot.slane %v430_v29, 4 }
 0x2c6   : > { %v432_v31 = vadd.f32 %v431_v30, %v430_v29 }
 0x2c8   : > { %v433_v32 = vrot.slane %v432_v31, 2 }
 0x2ca   : > { %v434_v33 = vadd.f32 %v433_v32, %v432_v31 }
 0x2cc   : > { %v435_v34 = vrot.slane %v434_v33, 1 }
 0x2ce   : > { %v436_v35 = vadd.f32 %v435_v34, %v434_v33 }
 0x2d0   : > { %573 = vpush %v436_v35 }
 0x301   : > { %s574_s30 = spop %573 }
 0x302   : > { %s438_s6 = smul.f32 0.5, %s574_s30 }
 0x304   : > { %p277_p1 = scmp.ge.f32.partialorder %s438_s6, 0.1 }
 0x306   : > { %p278_p2 = pnand %p277_p1, %p276_p0 }
 0x307   :  { %v442_v36 = vadd.f32 (%p278_p2), %v412_v28, %v882_v63  ;;  %v440_v37 = vadd.f32 (%p278_p2), %v411_v26, %v875_v40  ;;  %v443_v38 = vadd.f32 (%p278_p2), %v412_v28, %v897_v8  ;;  %v441_v39 = vadd.f32 (%p278_p2), %v411_v26, %v885_v1  ;;  %457 = vst.msk [vmem:[%s1018_s4] sm:$0xff] (%p278_p2), %vm290_vm1, %v803_v48  ;;  %499 = sst [smem:[#allocation2]] (%p278_p2), %s1020_s29  ;;  %s668_s24 = scalar_lea.hbm (%p278_p2), %s1019_s5, 16 }
 0x308   :  { %281 = sbr.rel (!%p278_p2) target bundleno = 226 (0xe2), region = 60  ;;  %458 = vst.msk [vmem:[%s1018_s4 + $0x8] sm:$0xff] (%p278_p2), %vm290_vm1, %v799_v46  ;;  %459 = vst.msk [vmem:[%s1018_s4 + $0x10] sm:$0xff] (%p278_p2), %vm290_vm1, %v805_v49  ;;  %p669_p3 = scmp.ne.s32.totalorder (%p278_p2), %s1019_s5, %s668_s24 }
 0x309   :  { %460 = vst.msk [vmem:[%s1018_s4 + $0x18] sm:$0xff] (%p278_p2), %vm290_vm1, %v801_v47  ;;  %v446_v54 = vadd.f32 (%p278_p2), %v442_v36, %v817_v53  ;;  %v444_v55 = vadd.f32 (%p278_p2), %v440_v37, %v814_v52  ;;  %v447_v40 = vadd.f32 (%p278_p2), %v443_v38, %v811_v51  ;;  %v445_v63 = vadd.f32 (%p278_p2), %v441_v39, %v808_v50  ;;  %p672_p4 = scmp.lt.u32.totalorder (%p278_p2), %s668_s24, %s1019_s5 }
 0x30b   :  { %v452_v1 = vmul.f32 (%p278_p2), 1.442695, %v446_v54  ;;  %v448_v8 = vmul.f32 (%p278_p2), 1.442695, %v444_v55  ;;  %v454_v41 = vmul.f32 (%p278_p2), 1.442695, %v447_v40  ;;  %p674_p5 = pnand (%p278_p2), %p672_p4, %p669_p3 }
 0x30c   :  { %v450_v42 = vmul.f32 (%p278_p2), 1.442695, %v445_v63 }
 0x30d   :  { %660 = vpow2.f32 (%p278_p2), %v452_v1 }
 0x30e   :  { %662 = vpow2.f32 (%p278_p2), %v448_v8 }
 0x30f   :  { %664 = vpow2.f32 %v454_v41 }
 0x310   :  { %666 = vpow2.f32 %v450_v42 }
 0x317   :  { %v661_v43 = vpop.eup %660 }
 0x318   :  { %v663_v44 = vpop.eup %662  ;;  %v467_v45 = vmul.f32 %v661_v43, %v805_v49  ;;  %463 = vst.msk [vmem:[%s1017_s3 + $0x10] sm:$0xff] %vm290_vm1, %v661_v43 }
 0x319   :  { %v665_v51 = vpop.eup %664  ;;  %v465_v50 = vmul.f32 %v663_v44, %v803_v48  ;;  %461 = vst.msk [vmem:[%s1017_s3] sm:$0xff] %vm290_vm1, %v663_v44 }
 0x31a   :  { %v667_v52 = vpop.eup %666  ;;  %v475_v53 = vsel %vm290_vm1, %v467_v45, 0.0  ;;  %464 = vst.msk [vmem:[%s1017_s3 + $0x18] sm:$0xff] %vm290_vm1, %v665_v51  ;;  %v468_v49 = vmul.f32 %v665_v51, %v801_v47 }
 0x31b   :  { %476 = vadd.xlane.f32.xlu1 %v475_v53  ;;  %v469_v60 = vsel %vm290_vm1, %v465_v50, 0.0  ;;  %462 = vst.msk [vmem:[%s1017_s3 + $0x8] sm:$0xff] %vm290_vm1, %v667_v52  ;;  %v466_v48 = vmul.f32 %v667_v52, %v799_v46 }
 0x31c   :  { %470 = vadd.xlane.f32.xlu0 %v469_v60  ;;  %v478_v61 = vsel %vm290_vm1, %v468_v49, 0.0 }
 0x31d   :  { %v472_v62 = vsel %vm290_vm1, %v466_v48, 0.0 }
 0x31f   :  { %479 = vadd.xlane.f32.xlu1 %v478_v61 }
 0x320   :  { %473 = vadd.xlane.f32.xlu0 %v472_v62 }
 0x321   :  { %677 = shalt.err (!%p674_p5)
}
 0x322   :  { %s736_s3 = smov [#allocation2]   ;;  %vm495_vm3 = vcmask 0  }
 0x323   :  { %513 = dma.smem_to_hbm %s736_s3, 16, %s1019_s5, [#allocation3]  }
 0x3a8   :  { %v477_v46 = vpop.xlane.xlu1 %476 }
 0x3a9   :  { %v471_v47 = vpop.xlane.xlu0 %470 }
 0x3ac   :  { %v480_v0 = vpop.xlane.xlu1 %479 }
 0x3ad   :  { %v488_v2 = vadd.f32 %v480_v0, %v477_v46  ;;  %v474_v3 = vpop.xlane.xlu0 %473 }
 0x3ae   :  { %v481_v4 = vadd.f32 %v474_v3, %v471_v47 }
 0x3af   :  { %v489_v5 = vrot.slane %v488_v2, 4 }
 0x3b0   :  { %v482_v6 = vrot.slane %v481_v4, 4 }
 0x3b1   :  { %v490_v59 = vadd.f32 %v489_v5, %v488_v2 }
 0x3b2   :  { %v483_v7 = vadd.f32 %v482_v6, %v481_v4 }
 0x3b3   :  { %v491_v9 = vrot.slane %v490_v59, 2 }
 0x3b4   :  { %v484_v10 = vrot.slane %v483_v7, 2 }
 0x3b5   :  { %v492_v11 = vadd.f32 %v491_v9, %v490_v59 }
 0x3b6   :  { %v485_v12 = vadd.f32 %v484_v10, %v483_v7 }
 0x3b7   :  { %v493_v57 = vrot.slane %v492_v11, 1 }
 0x3b8   :  { %v486_v13 = vrot.slane %v485_v12, 1 }
 0x3b9   :  { %v494_v14 = vadd.f32 %v493_v57, %v492_v11 }
 0x3ba   :  { %v487_v58 = vadd.f32 %v486_v13, %v485_v12 }
 0x3bb   :  { %497 = vst.msk [vmem:[%s1016_s2 + $0x1] sm:$0x1] %vm495_vm3, %v494_v14 }
 0x3bc   :  { %496 = vst.msk [vmem:[%s1016_s2] sm:$0x1] %vm495_vm3, %v487_v58 }
 0x3bd   :  { %706 = dma.done.wait [#allocation3], 16  }
 0x3be   :  { %707 = vsyncadd [#allocation3], 4294967280 }
 0x3bf   :  { %523 = sfence }
 0x3c0   :  { %524 = vsyncpa [#allocation3], 1 }

</bundles_post_ra>
